<compile_context>
chip_gen: v6e
topology: v6e:2x2x1
jax: 0.10.0
libtpu: 0.0.40
codegen_flags: <defaults>
</compile_context>

<pallas_src>
import jax
import jax.numpy as jnp
from jax.experimental import pallas as pl
from jax.experimental.pallas import tpu as pltpu


def _round_up(n, m):
    return -(-n // m) * m


# ----------------------------- kernel ---------------------------------------


def _make_encoder_kernel(x_layers, u_layers, dim_z):
    """x_layers / u_layers: tuples of (row_offset, out_dim, in_dim) indexing the
    packed weight/bias slabs.  The last layer of each chain has no tanh."""

    def run_chain(h, layers, w_ref, b_ref):
        n = len(layers)
        for li, (r0, dout, din) in enumerate(layers):
            w = w_ref[r0:r0 + dout, 0:din]          # static view into W slab
            b = b_ref[r0:r0 + dout, :]              # (dout, 1), broadcast on lanes
            h = jnp.dot(w, h, preferred_element_type=jnp.float32) + b
            if li < n - 1:
                h = jnp.tanh(h)
        return h

    def kernel(x_ref, u_ref, w_ref, b_ref, out_ref):
        # Fused x chain: final rows are [z_mean; z_logvar] (2*dim_z, bt).
        hx = run_chain(x_ref[...], x_layers, w_ref, b_ref)
        # u chain: final rows are [lam_mean; lam_logvar] (2*dim_z, bt).
        hu = run_chain(u_ref[...], u_layers, w_ref, b_ref)

        z_mean, z_logvar = hx[0:dim_z, :], hx[dim_z:2 * dim_z, :]
        lam_mean, lam_logvar = hu[0:dim_z, :], hu[dim_z:2 * dim_z, :]

        # Full posterior (stable rewrite of the PyTorch formula):
        #   post_mean   = z_mean*(1-s) + lam_mean*s,  s = sigmoid(z_lv - lam_lv)
        #   post_logvar = z_logvar - softplus(z_lv - lam_lv)
        d = z_logvar - lam_logvar
        s = 0.5 * (1.0 + jnp.tanh(0.5 * d))
        post_mean = z_mean + (lam_mean - z_mean) * s
        softplus_d = jnp.maximum(d, 0.0) + jnp.log(1.0 + jnp.exp(-jnp.abs(d)))
        post_logvar = z_logvar - softplus_d

        # Single lane-dense store: [post_mean; post_logvar; lam_mean; lam_logvar].
        out_ref[...] = jnp.concatenate(
            [post_mean, post_logvar, lam_mean, lam_logvar], axis=0)

    return kernel


# ------------------------- wrapper-side param packing -------------------------


def _pack_params(params, dim_z):
    """Fuses encoder_x_mean/encoder_x_logvar into one block-diagonal chain,
    converts every layer to (out, in) form, and packs ALL weights/biases into
    two constant slabs.  Returns (w_slab, b_slab, x_layers, u_layers) where the
    layer tuples hold (row_offset, out_dim, in_dim)."""
    xm, xl, pu = params["xm"], params["xl"], params["u"]
    assert len(xm) == len(xl) and len(xm) >= 2 and len(pu) >= 2
    for (wm, bm), (wl, bl) in zip(xm, xl):
        assert wm.shape == wl.shape and bm.shape == bl.shape, (
            "encoder_x_mean / encoder_x_logvar must share layer shapes")

    def col(b):                                    # (1, out) -> (out, 1)
        return jnp.reshape(b, (-1, 1))

    # Fused x chain in (out, in) form.  Layer 0 stacks mean/logvar rows; every
    # later layer (hidden and final) is block-diagonal, so the final output
    # rows are [z_mean; z_logvar].
    x_pairs = [(jnp.concatenate([xm[0][0].T, xl[0][0].T], axis=0),
                jnp.concatenate([col(xm[0][1]), col(xl[0][1])], axis=0))]
    for i in range(1, len(xm)):
        wm, bm = xm[i]
        wl, bl = xl[i]
        wmT, wlT = wm.T, wl.T
        top = jnp.concatenate(
            [wmT, jnp.zeros((wmT.shape[0], wlT.shape[1]), wmT.dtype)], axis=1)
        bot = jnp.concatenate(
            [jnp.zeros((wlT.shape[0], wmT.shape[1]), wlT.dtype), wlT], axis=1)
        x_pairs.append((jnp.concatenate([top, bot], axis=0),
                        jnp.concatenate([col(bm), col(bl)], axis=0)))

    # u chain: plain transposed layers; its final (2*dim_z, H_u) layer already
    # stacks [lam_mean; lam_logvar] on rows.
    u_pairs = [(w.T, col(b)) for w, b in pu]

    all_pairs = x_pairs + u_pairs
    c_max = max(w.shape[1] for w, _ in all_pairs)

    w_blocks, b_blocks = [], []
    x_layers, u_layers = [], []
    row = 0

    def add(pairs, layers):
        nonlocal row
        for w, b in pairs:
            dout, din = w.shape
            dout8 = _round_up(dout, 8)             # sublane-align every block
            w_blocks.append(jnp.pad(w, ((0, dout8 - dout), (0, c_max - din))))
            b_blocks.append(jnp.pad(b, ((0, dout8 - dout), (0, 0))))
            layers.append((row, dout, din))
            row += dout8

    add(x_pairs, x_layers)
    add(u_pairs, u_layers)

    w_slab = jnp.concatenate(w_blocks, axis=0).astype(jnp.float32)
    b_slab = jnp.concatenate(b_blocks, axis=0).astype(jnp.float32)
    return w_slab, b_slab, tuple(x_layers), tuple(u_layers)


# ----------------------------- wrapper ---------------------------------------


def encoder_pivae_forward(x, u, params, dim_z, *, batch_tile=None):
    """params = dict with keys 'xm', 'xl', 'u', each a list of (W, b) pairs with
    W stored as (in, out), b as (1, out).  act=tanh, full_posterior=True,
    u_in_encoderx=False."""
    B, dim_x = x.shape
    _, dim_u = u.shape

    # Batch lives on lanes: pad to a multiple of 128 and size the tile so the
    # grid has at most 2 "parallel" steps (one per v7x TensorCore; the extra
    # ~0.35us step is negligible on single-core v5e/v6e).
    if batch_tile is None:
        bt = 128 if B <= 128 else _round_up(B, 256) // 2
    else:
        bt = max(128, _round_up(batch_tile, 128))
    Bp = _round_up(B, bt)

    if Bp != B:
        x = jnp.pad(x, ((0, Bp - B), (0, 0)))
        u = jnp.pad(u, ((0, Bp - B), (0, 0)))
    xt = x.T.astype(jnp.float32)                   # (dim_x, Bp)
    ut = u.T.astype(jnp.float32)                   # (dim_u, Bp)

    w_slab, b_slab, x_layers, u_layers = _pack_params(params, dim_z)

    in_specs = [
        pl.BlockSpec((dim_x, bt), lambda i: (0, i)),
        pl.BlockSpec((dim_u, bt), lambda i: (0, i)),
        pl.BlockSpec(w_slab.shape, lambda i: (0, 0)),   # constant slabs: same
        pl.BlockSpec(b_slab.shape, lambda i: (0, 0)),   # block -> fetched once
    ]
    out_spec = pl.BlockSpec((4 * dim_z, bt), lambda i: (0, i))

    packed = pl.pallas_call(
        _make_encoder_kernel(x_layers, u_layers, dim_z),
        out_shape=jax.ShapeDtypeStruct((4 * dim_z, Bp), jnp.float32),
        grid=(Bp // bt,),
        in_specs=in_specs,
        out_specs=out_spec,
        compiler_params=pltpu.CompilerParams(
            dimension_semantics=("parallel",)),
    )(xt, ut, w_slab, b_slab)

    # Wrapper-side post-processing: one transpose back to batch-major plus
    # cheap slices (a consumer that accepts the transposed packed slab should
    # take `packed` directly and skip this).
    packed = packed[:, :B].T                       # (B, 4*dim_z)
    return (packed[:, 0 * dim_z:1 * dim_z],
            packed[:, 1 * dim_z:2 * dim_z],
            packed[:, 2 * dim_z:3 * dim_z],
            packed[:, 3 * dim_z:4 * dim_z])


# ------------------------ deterministic param init ---------------------------


def _init_mlp(key, dim_in, hidden, dim_out, n_layers):
    """Returns list of (W, b) with W stored as (in, out), biases as (1, out)."""
    dims = [dim_in] + [hidden] * n_layers + [dim_out]
    pairs = []
    for i in range(len(dims) - 1):
        key, kw, kb = jax.random.split(key, 3)
        scale = 1.0 / jnp.sqrt(jnp.float32(dims[i]))
        w = jax.random.uniform(
            kw, (dims[i], dims[i + 1]), jnp.float32, -scale, scale)
        b = jax.random.uniform(
            kb, (1, dims[i + 1]), jnp.float32, -scale, scale)
        pairs.append((w, b))
    return pairs, key


# ------------------------------ reference ------------------------------------


def _ref_forward(x, u, params, dim_z):
    """Pure-JAX reference using the original (unfused) params & PyTorch math."""
    def mlp(h, pairs):
        for i, (w, b) in enumerate(pairs):
            h = h @ w + b
            if i < len(pairs) - 1:
                h = jnp.tanh(h)
        return h

    z_mean = mlp(x, params["xm"])
    z_logvar = mlp(x, params["xl"])
    lam = mlp(u, params["u"])
    lam_mean, lam_logvar = lam[:, :dim_z], lam[:, dim_z:]
    post_mean = z_mean / (1.0 + jnp.exp(z_logvar - lam_logvar)) + lam_mean / (
        1.0 + jnp.exp(lam_logvar - z_logvar))
    post_logvar = z_logvar + lam_logvar - jnp.log(
        jnp.exp(z_logvar) + jnp.exp(lam_logvar))
    return post_mean, post_logvar, lam_mean, lam_logvar


# -------------------------------- main ---------------------------------------

if __name__ == "__main__":
    # Small PiVAE config; batch 512 -> batch tile 256 -> exactly two "parallel"
    # grid steps (one per v7x TensorCore, near-zero extra cost on v5e/v6e).
    B = 512
    dim_x, dim_u, dim_z = 16, 4, 8
    gen_nodes_x, gen_nodes_u = 32, 32
    n_layers_x, n_layers_u = 2, 2

    key = jax.random.PRNGKey(0)
    key, kx, ku = jax.random.split(key, 3)
    x = jax.random.normal(kx, (B, dim_x), jnp.float32)
    u = jax.random.normal(ku, (B, dim_u), jnp.float32)

    xm_pairs, key = _init_mlp(key, dim_x, gen_nodes_x, dim_z, n_layers_x)
    xl_pairs, key = _init_mlp(key, dim_x, gen_nodes_x, dim_z, n_layers_x)
    u_pairs, key = _init_mlp(key, dim_u, gen_nodes_u, 2 * dim_z, n_layers_u)
    params = {"xm": xm_pairs, "xl": xl_pairs, "u": u_pairs}

    outs = encoder_pivae_forward(x, u, params, dim_z)
    outs = jax.block_until_ready(outs)

    refs = _ref_forward(x, u, params, dim_z)
    for o, r in zip(outs, refs):
        assert o.shape == (B, dim_z)
        err = float(jnp.max(jnp.abs(o - r)))
        assert jnp.allclose(o, r, atol=1e-4, rtol=1e-4), err

    print("KERNEL_OK")
</pallas_src>

<mosaic_0001>
module attributes {stable_mosaic.version = 11 : i64} {
  func.func @kernel(%arg0: i32, %arg1: memref<16x256xf32, #tpu.memory_space<vmem>>, %arg2: memref<4x256xf32, #tpu.memory_space<vmem>>, %arg3: memref<224x64xf32, #tpu.memory_space<vmem>>, %arg4: memref<224x1xf32, #tpu.memory_space<vmem>>, %arg5: memref<32x256xf32, #tpu.memory_space<vmem>>) attributes {dimension_semantics = [#tpu.dimension_semantics<parallel>], iteration_bounds = array<i64: 2>, scalar_prefetch = 0 : i64, scratch_operands = 0 : i64, tpu.core_type = #tpu.core_type<tc>, window_params = [{transform_indices = @transform_0, window_bounds = array<i64: 16, 256>}, {transform_indices = @transform_1, window_bounds = array<i64: 4, 256>}, {pipeline_mode = #tpu.pipeline_mode<synchronous>, transform_indices = @transform_2, window_bounds = array<i64: 224, 64>}, {pipeline_mode = #tpu.pipeline_mode<synchronous>, transform_indices = @transform_3, window_bounds = array<i64: 224, 1>}, {transform_indices = @transform_4, window_bounds = array<i64: 32, 256>}]} {
    %c0 = arith.constant 0 : index
    %c0_0 = arith.constant 0 : index
    %0 = vector.load %arg1[%c0, %c0_0] : memref<16x256xf32, #tpu.memory_space<vmem>>, vector<16x256xf32>
    %c0_1 = arith.constant 0 : index
    %c0_2 = arith.constant 0 : index
    %1 = vector.load %arg3[%c0_1, %c0_2] : memref<224x64xf32, #tpu.memory_space<vmem>>, vector<64x16xf32>
    %c0_3 = arith.constant 0 : index
    %c0_4 = arith.constant 0 : index
    %2 = vector.load %arg4[%c0_3, %c0_4] : memref<224x1xf32, #tpu.memory_space<vmem>>, vector<64x1xf32>
    %cst = arith.constant dense<0.000000e+00> : vector<64x256xf32>
    %3 = tpu.matmul %1, %0, %cst {dimension_numbers = #tpu.dot_dimension_numbers<[1], [0], [0], [1], [0, 0, 1, 1], [], []>} : vector<64x16xf32>, vector<16x256xf32>, vector<64x256xf32> -> vector<64x256xf32>
    %4 = vector.broadcast %2 : vector<64x1xf32> to vector<64x256xf32>
    %5 = arith.addf %3, %4 : vector<64x256xf32>
    %6 = math.tanh %5 : vector<64x256xf32>
    %c64 = arith.constant 64 : index
    %c0_5 = arith.constant 0 : index
    %7 = vector.load %arg3[%c64, %c0_5] : memref<224x64xf32, #tpu.memory_space<vmem>>, vector<64x64xf32>
    %c64_6 = arith.constant 64 : index
    %c0_7 = arith.constant 0 : index
    %8 = vector.load %arg4[%c64_6, %c0_7] : memref<224x1xf32, #tpu.memory_space<vmem>>, vector<64x1xf32>
    %cst_8 = arith.constant dense<0.000000e+00> : vector<64x256xf32>
    %9 = tpu.matmul %7, %6, %cst_8 {dimension_numbers = #tpu.dot_dimension_numbers<[1], [0], [0], [1], [0, 0, 1, 1], [], []>} : vector<64x64xf32>, vector<64x256xf32>, vector<64x256xf32> -> vector<64x256xf32>
    %10 = vector.broadcast %8 : vector<64x1xf32> to vector<64x256xf32>
    %11 = arith.addf %9, %10 : vector<64x256xf32>
    %12 = math.tanh %11 : vector<64x256xf32>
    %c128 = arith.constant 128 : index
    %c0_9 = arith.constant 0 : index
    %13 = vector.load %arg3[%c128, %c0_9] : memref<224x64xf32, #tpu.memory_space<vmem>>, vector<16x64xf32>
    %c128_10 = arith.constant 128 : index
    %c0_11 = arith.constant 0 : index
    %14 = vector.load %arg4[%c128_10, %c0_11] : memref<224x1xf32, #tpu.memory_space<vmem>>, vector<16x1xf32>
    %cst_12 = arith.constant dense<0.000000e+00> : vector<16x256xf32>
    %15 = tpu.matmul %13, %12, %cst_12 {dimension_numbers = #tpu.dot_dimension_numbers<[1], [0], [0], [1], [0, 0, 1, 1], [], []>} : vector<16x64xf32>, vector<64x256xf32>, vector<16x256xf32> -> vector<16x256xf32>
    %16 = vector.broadcast %14 : vector<16x1xf32> to vector<16x256xf32>
    %17 = arith.addf %15, %16 : vector<16x256xf32>
    %c0_13 = arith.constant 0 : index
    %c0_14 = arith.constant 0 : index
    %18 = vector.load %arg2[%c0_13, %c0_14] : memref<4x256xf32, #tpu.memory_space<vmem>>, vector<4x256xf32>
    %c144 = arith.constant 144 : index
    %c0_15 = arith.constant 0 : index
    %19 = vector.load %arg3[%c144, %c0_15] : memref<224x64xf32, #tpu.memory_space<vmem>>, vector<32x4xf32>
    %c144_16 = arith.constant 144 : index
    %c0_17 = arith.constant 0 : index
    %20 = vector.load %arg4[%c144_16, %c0_17] : memref<224x1xf32, #tpu.memory_space<vmem>>, vector<32x1xf32>
    %cst_18 = arith.constant dense<0.000000e+00> : vector<32x256xf32>
    %21 = tpu.matmul %19, %18, %cst_18 {dimension_numbers = #tpu.dot_dimension_numbers<[1], [0], [0], [1], [0, 0, 1, 1], [], []>} : vector<32x4xf32>, vector<4x256xf32>, vector<32x256xf32> -> vector<32x256xf32>
    %22 = vector.broadcast %20 : vector<32x1xf32> to vector<32x256xf32>
    %23 = arith.addf %21, %22 : vector<32x256xf32>
    %24 = math.tanh %23 : vector<32x256xf32>
    %c176 = arith.constant 176 : index
    %c0_19 = arith.constant 0 : index
    %25 = vector.load %arg3[%c176, %c0_19] : memref<224x64xf32, #tpu.memory_space<vmem>>, vector<32x32xf32>
    %c176_20 = arith.constant 176 : index
    %c0_21 = arith.constant 0 : index
    %26 = vector.load %arg4[%c176_20, %c0_21] : memref<224x1xf32, #tpu.memory_space<vmem>>, vector<32x1xf32>
    %cst_22 = arith.constant dense<0.000000e+00> : vector<32x256xf32>
    %27 = tpu.matmul %25, %24, %cst_22 {dimension_numbers = #tpu.dot_dimension_numbers<[1], [0], [0], [1], [0, 0, 1, 1], [], []>} : vector<32x32xf32>, vector<32x256xf32>, vector<32x256xf32> -> vector<32x256xf32>
    %28 = vector.broadcast %26 : vector<32x1xf32> to vector<32x256xf32>
    %29 = arith.addf %27, %28 : vector<32x256xf32>
    %30 = math.tanh %29 : vector<32x256xf32>
    %c208 = arith.constant 208 : index
    %c0_23 = arith.constant 0 : index
    %31 = vector.load %arg3[%c208, %c0_23] : memref<224x64xf32, #tpu.memory_space<vmem>>, vector<16x32xf32>
    %c208_24 = arith.constant 208 : index
    %c0_25 = arith.constant 0 : index
    %32 = vector.load %arg4[%c208_24, %c0_25] : memref<224x1xf32, #tpu.memory_space<vmem>>, vector<16x1xf32>
    %cst_26 = arith.constant dense<0.000000e+00> : vector<16x256xf32>
    %33 = tpu.matmul %31, %30, %cst_26 {dimension_numbers = #tpu.dot_dimension_numbers<[1], [0], [0], [1], [0, 0, 1, 1], [], []>} : vector<16x32xf32>, vector<32x256xf32>, vector<16x256xf32> -> vector<16x256xf32>
    %34 = vector.broadcast %32 : vector<16x1xf32> to vector<16x256xf32>
    %35 = arith.addf %33, %34 : vector<16x256xf32>
    %36 = vector.extract_strided_slice %17 {offsets = [0, 0], sizes = [8, 256], strides = [1, 1]} : vector<16x256xf32> to vector<8x256xf32>
    %37 = vector.extract_strided_slice %17 {offsets = [8, 0], sizes = [8, 256], strides = [1, 1]} : vector<16x256xf32> to vector<8x256xf32>
    %38 = vector.extract_strided_slice %35 {offsets = [0, 0], sizes = [8, 256], strides = [1, 1]} : vector<16x256xf32> to vector<8x256xf32>
    %39 = vector.extract_strided_slice %35 {offsets = [8, 0], sizes = [8, 256], strides = [1, 1]} : vector<16x256xf32> to vector<8x256xf32>
    %40 = arith.subf %37, %39 : vector<8x256xf32>
    %cst_27 = arith.constant 5.000000e-01 : f32
    %41 = vector.broadcast %cst_27 : f32 to vector<8x256xf32>
    %42 = arith.mulf %41, %40 : vector<8x256xf32>
    %43 = math.tanh %42 : vector<8x256xf32>
    %cst_28 = arith.constant 1.000000e+00 : f32
    %44 = vector.broadcast %cst_28 : f32 to vector<8x256xf32>
    %45 = arith.addf %44, %43 : vector<8x256xf32>
    %cst_29 = arith.constant 5.000000e-01 : f32
    %46 = vector.broadcast %cst_29 : f32 to vector<8x256xf32>
    %47 = arith.mulf %46, %45 : vector<8x256xf32>
    %48 = arith.subf %38, %36 : vector<8x256xf32>
    %49 = arith.mulf %48, %47 : vector<8x256xf32>
    %50 = arith.addf %36, %49 : vector<8x256xf32>
    %cst_30 = arith.constant 0.000000e+00 : f32
    %51 = vector.broadcast %cst_30 : f32 to vector<8x256xf32>
    %52 = arith.maximumf %40, %51 : vector<8x256xf32>
    %53 = math.absf %40 : vector<8x256xf32>
    %cst_31 = arith.constant 0.000000e+00 : f32
    %54 = vector.broadcast %cst_31 : f32 to vector<8x256xf32>
    %55 = arith.subf %54, %53 : vector<8x256xf32>
    %56 = math.exp %55 : vector<8x256xf32>
    %cst_32 = arith.constant 1.000000e+00 : f32
    %57 = vector.broadcast %cst_32 : f32 to vector<8x256xf32>
    %58 = arith.addf %57, %56 : vector<8x256xf32>
    %59 = math.log %58 : vector<8x256xf32>
    %60 = arith.addf %52, %59 : vector<8x256xf32>
    %61 = arith.subf %37, %60 : vector<8x256xf32>
    %62 = tpu.concatenate %50, %61, %38, %39 in 0 : vector<8x256xf32>, vector<8x256xf32>, vector<8x256xf32>, vector<8x256xf32> -> vector<32x256xf32>
    %c0_33 = arith.constant 0 : index
    %c0_34 = arith.constant 0 : index
    %63 = vector.load %arg5[%c0_33, %c0_34] : memref<32x256xf32, #tpu.memory_space<vmem>>, vector<32x256xf32>
    tpu.vector_store %arg5[%c0_33, %c0_34], %62 {strides = array<i32>} : memref<32x256xf32, #tpu.memory_space<vmem>>, vector<32x256xf32>,
    return
  }
  func.func @transform_0(%arg0: i32) -> (i32, i32) {
    %c0_i32 = arith.constant 0 : i32
    %c0_i32_0 = arith.constant 0 : i32
    return %c0_i32, %arg0 : i32, i32
  }
  func.func @transform_1(%arg0: i32) -> (i32, i32) {
    %c0_i32 = arith.constant 0 : i32
    %c0_i32_0 = arith.constant 0 : i32
    return %c0_i32, %arg0 : i32, i32
  }
  func.func @transform_2(%arg0: i32) -> (i32, i32) {
    %c0_i32 = arith.constant 0 : i32
    %c0_i32_0 = arith.constant 0 : i32
    %c0_i32_1 = arith.constant 0 : i32
    return %c0_i32, %c0_i32_0 : i32, i32
  }
  func.func @transform_3(%arg0: i32) -> (i32, i32) {
    %c0_i32 = arith.constant 0 : i32
    %c0_i32_0 = arith.constant 0 : i32
    %c0_i32_1 = arith.constant 0 : i32
    return %c0_i32, %c0_i32_0 : i32, i32
  }
  func.func @transform_4(%arg0: i32) -> (i32, i32) {
    %c0_i32 = arith.constant 0 : i32
    %c0_i32_0 = arith.constant 0 : i32
    return %c0_i32, %arg0 : i32, i32
  }
}

</mosaic_0001>

<bundles_post_ra>
// kernel: tpu_custom_call.1
= control target key start
LH: loop header
LB: loop body
LE: loop exit
PB: predicated region body
PF: predicated region fallthrough
CT: control target
= control target key end

     0   :  { %9 = vsyncpa [#allocation4], 0  ;;  %s1940_s0 = inlined_call_operand.vmem [shape: f32[16,512], index: 0, kind: input, shape index: {}]   ;;  %s1941_s1 = inlined_call_operand.vmem [shape: f32[4,512], index: 1, kind: input, shape index: {}]   ;;  %s1942_s2 = inlined_call_operand.vmem [shape: f32[224,64], index: 2, kind: input, shape index: {}]   ;;  %s1943_s3 = inlined_call_operand.vmem [shape: f32[224,1], index: 3, kind: input, shape index: {}]   ;;  %s1944_s4 = inlined_call_operand.hbm [shape: f32[32,512], index: 4, kind: output, shape index: {}]  }
   0x1   :  { %11 = vsyncpa [#allocation4 + $0x1], 0  ;;  %s1582_s15 = smov 0   ;;  %s1584_s16 = smov 0  }
   0x2   :  { %s1586_s17 = smov 0   ;;  %s1588_s18 = smov 0  }
   0x3 LB: > { %s1603_s19 = sadd.s32 4294967295, %s1549_s18   ;;  %s1286_s20 = sadd.s32 4294967294, %s1549_s18   ;;  %s1549_s18 = sphi %s1588_s18, %s1950_s18   ;;  %s1545_s17 = sphi %s1586_s17, %s1949_s17   ;;  %s1541_s16 = sphi %s1584_s16, %s1948_s16   ;;  %s1537_s15 = sphi %s1582_s15, %s1947_s15  }
   0x4   : > { %s1607_s21 = sadd.s32 1, %s1549_s18   ;;  %s24_s22 = sadd.s32 1, %s1545_s17 }
   0x5   : > { %s21_s23 = ssub.s32 %s1549_s18, %s1607_s21  ;;  %p31_p0 = scmp.ne.s32.totalorder %s1545_s17, %s1541_s16 }
   0x6   : > { %p22_p1 = scmp.eq.s32.totalorder %s21_s23, 0  ;;  %p32_p2 = scmp.eq.s32.totalorder %s1549_s18, 0 }
   0x7   : > { %p129_p3 = scmp.eq.s32.totalorder %s1603_s19, 1  ;;  %p134_p4 = scmp.ne.s32.totalorder %s1541_s16, %s1537_s15 }
   0x8   : > { %s1619_s24 = scalar_select %p22_p1, %s1545_s17, %s24_s22  }
   0x9   : > { %p33_p5 = por %p32_p2, %p31_p0  ;;  %p1621_p6 = por %p129_p3, %p31_p0 }
   0xa   : > { %p135_p7 = scmp.eq.s32.totalorder %s1286_s20, 1  ;;  %p1288_p9 = scmp.ge.s32.totalorder %s1549_s18, 2 }
   0xc   : > { %p1625_p8 = por %p135_p7, %p134_p4  ;;  %157 = sbr.rel (%p1288_p9) target bundleno = 23 (0x17), region = 24 }
  0x11   : > { %160 = sbr.rel (!%p33_p5) target bundleno = 23 (0x17), region = 28  ;;  %s162_s27 = sand.u32 (%p33_p5), 1, %s1545_s17  }
  0x12   : > { %s1332_s28 = sshll.u32 (%p33_p5), %s1549_s18, 4  ;;  %s1289_s29 = sshll.u32 (%p33_p5), %s162_s27, 5 }
  0x13   : > { %s167_s6 = scalar_lea.vmem (%p33_p5), %s1940_s0, %s1332_s28  ;;  %s164_s7 = scalar_lea.vmem (%p33_p5), [#allocation2], %s1289_s29 }
  0x14   : > { %v180_v0 = vld [vmem:[%s167_s6] sm:$0xff] (%p33_p5)  ;;  %v182_v1 = vld [vmem:[%s167_s6 + $0x8] sm:$0xff] (%p33_p5) }
  0x15   : > { %v184_v2 = vld [vmem:[%s167_s6 + $0x20] sm:$0xff] (%p33_p5)  ;;  %181 = vst [vmem:[%s164_s7] sm:$0xff] (%p33_p5), %v180_v0  ;;  %183 = vst [vmem:[%s164_s7 + $0x8] sm:$0xff] (%p33_p5), %v182_v1  ;;  %v186_v3 = vld [vmem:[%s167_s6 + $0x28] sm:$0xff] (%p33_p5) }
  0x16   : > { %185 = vst [vmem:[%s164_s7 + $0x10] sm:$0xff] %v184_v2  ;;  %187 = vst [vmem:[%s164_s7 + $0x18] sm:$0xff] %v186_v3 }
  0x17 PF: > { %p1292_p10 = scmp.ge.s32.totalorder %s1549_s18, 1  ;;  %p201_p11 = scmp.lt.s32.totalorder %s1549_s18, 3 }
  0x19   : > { %p202_p12 = pnand %p1292_p10, %p201_p11 }
  0x1a   : > { %s1640_s8 = sand.u32 (!%p202_p12), 1, %s1541_s16   ;;  %s1295_s28 = sshll.u32 (!%p202_p12), %s1603_s19, 1 }
  0x1b   : > { %205 = sbr.rel (%p202_p12) target bundleno = 1279 (0x4ff), region = 55  ;;  %s1293_s9 = sshll.u32 (!%p202_p12), %s1640_s8, 5 }
  0x1c   : > { %s210_s12 = scalar_lea.vmem (!%p202_p12), [#allocation2], %s1293_s9  ;;  %p240_p13 = scmp.lt.s32.totalorder (!%p202_p12), %s1295_s28, 3 }
  0x1d   : > { %s1294_s22 = sshll.u32 (!%p202_p12), %s1640_s8, 6 }
  0x1e   : > { %s1876_s23 = scalar_lea.vmem (!%p202_p12), [#allocation3], %s1294_s22 }
  0x1f   : > { %s1206_s27 = sshll.u32 (!%p202_p12), %s1876_s23, 4  ;;  %s1890_s27 = int_to_ptr.vmem [resolvable:$true] %s1206_s27 }
  0x20   : > { %v1551_v4 = vmov 0.0   ;;  %v1552_v5 = vmov 0   ;;  %v265_v6 = vld [vmem:[%s1943_s3 + $0x38] sm:$0xff]  ;;  %v248_v8 = vld [vmem:[%s210_s12 + $0x10] sm:$0xff]  ;;  %v247_v9 = vld [vmem:[%s210_s12 + $0x8] sm:$0xff]  ;;  %vm306_vm0 = vcmask 130048  }
  0x21   : > { %395 = vmatprep.mubr.f32.mxu0 %v1551_v4  ;;  %605 = vmatprep.mubr.f32.mxu1 %v1551_v4  ;;  %v249_v7 = vld [vmem:[%s210_s12 + $0x18] sm:$0xff]  ;;  %v246_v10 = vld [vmem:[%s210_s12] sm:$0xff]  ;;  %v264_v11 = vld [vmem:[%s1943_s3 + $0x30] sm:$0xff]  ;;  %vm516_vm1 = vcmask 523264   ;;  %s1952_s28 = smov (!%p240_p13, %s1295_s28), 3  ;;  %vm811_vm2 = vcmask 1043456  }
  0x22   : > { %1378 = vset.pattern.permute.xlu0 %v1552_v5  ;;  %1379 = vset.pattern.permute.xlu1 %v1552_v5  ;;  %v263_v12 = vld [vmem:[%s1943_s3 + $0x28] sm:$0xff]  ;;  %v250_v13 = vld [vmem:[%s1942_s2] sm:$0xff]  ;;  %v261_v15 = vld [vmem:[%s1943_s3 + $0x18] sm:$0xff]  ;;  %s1296_s29 = sshll.u32 %s1952_s28, 2  ;;  %vm798_vm3 = vcmask 31744   ;;  %vm941_vm4 = vcmask 261120  }
  0x23   : > { %303 = vperm.xlu0 %1378, %v265_v6   ;;  %359 = vmatprep.subr.mxu0 %v249_v7  ;;  %v262_v14 = vld [vmem:[%s1943_s3 + $0x20] sm:$0xff]  ;;  %v251_v16 = vld [vmem:[%s1942_s2 + $0x8] sm:$0xff]  ;;  %v260_v17 = vld [vmem:[%s1943_s3 + $0x10] sm:$0xff]  ;;  %s243_s6 = scalar_lea.vmem %s1941_s1, %s1296_s29  ;;  %s1333_s28 = sshll.u32 %s1603_s19, 8 }
  0x24   : > { %360 = vmatpush1.msra.mxu0 %v248_v8  ;;  %293 = vperm.xlu1 %1379, %v263_v12   ;;  %v259_v18 = vld [vmem:[%s1943_s3 + $0x8] sm:$0xff]  ;;  %v252_v19 = vld [vmem:[%s1942_s2 + $0x10] sm:$0xff]  ;;  %v258_v20 = vld [vmem:[%s1943_s3] sm:$0xff]  ;;  %s1896_s5 = scalar_lea.hbm %s1944_s4, %s1333_s28  ;;  %s1489_s7 = scalar_lea.vmem %s1890_s27, 1024 }
  0x25   : > { %361 = vmatprep.subr.mxu0 %v247_v9  ;;  %v475_v21 = vld [vmem:[%s1943_s3 + $0x78] sm:$0xff]  ;;  %v474_v23 = vld [vmem:[%s1943_s3 + $0x70] sm:$0xff]  ;;  %v473_v24 = vld [vmem:[%s1943_s3 + $0x68] sm:$0xff]  ;;  %p1490_p0 = scmp.ne.s32.totalorder %s1890_s27, %s1489_s7  ;;  %s1553_s19 = smov [#allocation3]  }
  0x26   : > { %362 = vmatpush1.msra.mxu0 %v246_v10  ;;  %v253_v22 = vld [vmem:[%s1942_s2 + $0x18] sm:$0xff]  ;;  %v254_v25 = vld [vmem:[%s1942_s2 + $0x20] sm:$0xff]  ;;  %v255_v28 = vld [vmem:[%s1942_s2 + $0x28] sm:$0xff]  ;;  %s1493_s9 = sshll.u32 %s1553_s19, 4  ;;  %s1494_s9 = int_to_ptr.vmem [resolvable:$false] %s1493_s9 }
  0x27   : > { %298 = vperm.xlu0 %1378, %v264_v11   ;;  %1297 = vmatmul.mubr.msk.f32.vlgmr.msra.gmra.mxu0 %vm306_vm0, %v250_v13  ;;  %v472_v26 = vld [vmem:[%s1943_s3 + $0x60] sm:$0xff]  ;;  %v471_v27 = vld [vmem:[%s1943_s3 + $0x58] sm:$0xff]  ;;  %v470_v29 = vld [vmem:[%s1943_s3 + $0x50] sm:$0xff]  ;;  %p1491_p1 = pnand %p1490_p0, %p1621_p6  ;;  %s1495_s10 = scalar_lea.vmem %s1494_s9, 2048 }
  0x28   : > { %401 = vmatprep.mubr.f32.mxu0 %v1551_v4  ;;  %288 = vperm.xlu1 %1379, %v262_v14   ;;  %v469_v30 = vld [vmem:[%s1943_s3 + $0x48] sm:$0xff]  ;;  %v256_v31 = vld [vmem:[%s1942_s2 + $0x30] sm:$0xff]  ;;  %v468_v32 = vld [vmem:[%s1943_s3 + $0x40] sm:$0xff]  ;;  %p1496_p3 = scmp.lt.s32.totalorder %s1890_s27, %s1494_s9  ;;  %p1497_p4 = scmp.lt.s32.totalorder %s1495_s10, %s1489_s7 }
  0x29   : > { %v775_v33 = vld [vmem:[%s1943_s3 + $0xa8] sm:$0xff]  ;;  %v257_v34 = vld [vmem:[%s1942_s2 + $0x38] sm:$0xff]  ;;  %v774_v35 = vld [vmem:[%s1943_s3 + $0xa0] sm:$0xff]  ;;  %p1492_p2 = pneg %p1491_p1 }
  0x2a   : > { %v773_v36 = vld [vmem:[%s1943_s3 + $0x98] sm:$0xff]  ;;  %v772_v37 = vld [vmem:[%s1943_s3 + $0x90] sm:$0xff]  ;;  %v920_v38 = vld [vmem:[%s1943_s3 + $0xc8] sm:$0xff]  ;;  %p1498_p5 = por %p1497_p4, %p1496_p3 }
  0x2b   : > { %283 = vperm.xlu0 %1378, %v261_v15   ;;  %1298 = vmatmul.mubr.msk.f32.gmra.mxu0 %vm306_vm0, %v251_v16  ;;  %v919_v39 = vld [vmem:[%s1943_s3 + $0xc0] sm:$0xff]  ;;  %v918_v40 = vld [vmem:[%s1943_s3 + $0xb8] sm:$0xff]  ;;  %v917_v41 = vld [vmem:[%s1943_s3 + $0xb0] sm:$0xff] }
  0x2c   : > { %407 = vmatprep.mubr.f32.mxu0 %v1551_v4  ;;  %278 = vperm.xlu1 %1379, %v260_v17   ;;  %v673_v42 = vld [vmem:[%s1943_s3 + $0x88] sm:$0xff]  ;;  %v1054_v43 = vld [vmem:[%s1943_s3 + $0xd8] sm:$0xff]  ;;  %v672_v44 = vld [vmem:[%s1943_s3 + $0x80] sm:$0xff]  ;;  %p1499_p7 = pnand %p1498_p5, %p1492_p2 }
  0x2d   : > { %v1053_v45 = vld [vmem:[%s1943_s3 + $0xd0] sm:$0xff] }
  0x2f   : > { %273 = vperm.xlu0 %1378, %v259_v18   ;;  %1299 = vmatmul.mubr.msk.f32.gmra.mxu0 %vm306_vm0, %v252_v19 }
  0x30   : > { %413 = vmatprep.mubr.f32.mxu0 %v1551_v4  ;;  %268 = vperm.xlu1 %1379, %v258_v20  }
  0x33   : > { %513 = vperm.xlu0 %1378, %v475_v21   ;;  %1300 = vmatmul.mubr.msk.f32.gmra.mxu0 %vm306_vm0, %v253_v22 }
  0x34   : > { %419 = vmatprep.mubr.f32.mxu0 %v1551_v4  ;;  %508 = vperm.xlu1 %1379, %v474_v23  }
  0x37   : > { %503 = vperm.xlu0 %1378, %v473_v24   ;;  %1301 = vmatmul.mubr.msk.f32.gmra.mxu0 %vm306_vm0, %v254_v25 }
  0x38   : > { %425 = vmatprep.mubr.f32.mxu0 %v1551_v4  ;;  %498 = vperm.xlu1 %1379, %v472_v26  }
  0x3b   : > { %493 = vperm.xlu0 %1378, %v471_v27   ;;  %1302 = vmatmul.mubr.msk.f32.gmra.mxu0 %vm306_vm0, %v255_v28 }
  0x3c   : > { %431 = vmatprep.mubr.f32.mxu0 %v1551_v4  ;;  %488 = vperm.xlu1 %1379, %v470_v29  }
  0x3f   : > { %483 = vperm.xlu0 %1378, %v469_v30   ;;  %1303 = vmatmul.mubr.msk.f32.gmra.mxu0 %vm306_vm0, %v256_v31 }
  0x40   : > { %437 = vmatprep.mubr.f32.mxu0 %v1551_v4  ;;  %478 = vperm.xlu1 %1379, %v468_v32  }
  0x43   : > { %793 = vperm.xlu0 %1378, %v775_v33   ;;  %1304 = vmatmul.mubr.msk.f32.gmra.mxu0 %vm306_vm0, %v257_v34 }
  0x44   : > { %788 = vperm.xlu1 %1379, %v774_v35   ;;  %754 = vmatprep.mubr.f32.mxu0 %v1551_v4 }
  0x47   : > { %783 = vperm.xlu0 %1378, %v773_v36  }
  0x48   : > { %778 = vperm.xlu1 %1379, %v772_v37  }
  0x4b   : > { %938 = vperm.xlu0 %1378, %v920_v38   ;;  %v460_v38 = vld [vmem:[%s1942_s2 + $0x40] sm:$0xff] }
  0x4c   : > { %933 = vperm.xlu1 %1379, %v919_v39  }
  0x4f   : > { %928 = vperm.xlu0 %1378, %v918_v40   ;;  %v461_v40 = vld [vmem:[%s1942_s2 + $0x48] sm:$0xff] }
  0x50   : > { %923 = vperm.xlu1 %1379, %v917_v41   ;;  %v462_v41 = vld [vmem:[%s1942_s2 + $0x50] sm:$0xff] }
  0x53   : > { %681 = vperm.xlu0 %1378, %v673_v42   ;;  %v463_v42 = vld [vmem:[%s1942_s2 + $0x58] sm:$0xff] }
  0x54   : > { %1062 = vperm.xlu1 %1379, %v1054_v43   ;;  %v464_v43 = vld [vmem:[%s1942_s2 + $0x60] sm:$0xff] }
  0x57   : > { %676 = vperm.xlu0 %1378, %v672_v44   ;;  %v465_v44 = vld [vmem:[%s1942_s2 + $0x68] sm:$0xff] }
  0x58   : > { %1057 = vperm.xlu1 %1379, %v1053_v45   ;;  %v466_v45 = vld [vmem:[%s1942_s2 + $0x70] sm:$0xff] }
  0x9e   : > { %v304_v57 = vpop.permute.xlu0 %303 }
  0x9f   : > { %v294_v59 = vpop.permute.xlu1 %293 }
  0xa2   : > { %v299_v62 = vpop.permute.xlu0 %298 }
  0xa3   : > { %v289_v0 = vpop.permute.xlu1 %288 }
  0xa6   : > { %v284_v8 = vpop.permute.xlu0 %283 }
  0xa7   : > { %v279_v11 = vpop.permute.xlu1 %278 }
  0xaa   : > { %v274_v16 = vpop.permute.xlu0 %273 }
  0xab   : > { %v269_v19 = vpop.permute.xlu1 %268 }
  0xe7   : > { %v397_v46 = vpop.f32.mrf.mxu0 }
  0xe8   : > { %v398_v22 = vadd.f32 %v397_v46, %v269_v19  ;;  %v467_v46 = vld [vmem:[%s1942_s2 + $0x78] sm:$0xff] }
  0xe9   : > { %v399_v47 = vpop.f32.mrf.mxu0 }
  0xea   : > { %v400_v21 = vadd.f32 %v399_v47, %v269_v19 }
  0xeb   : > { %v403_v48 = vpop.f32.mrf.mxu0 }
  0xec   : > { %v404_v20 = vadd.f32 %v403_v48, %v274_v16 }
  0xed   : > { %v405_v49 = vpop.f32.mrf.mxu0 }
  0xee   : > { %v406_v18 = vadd.f32 %v405_v49, %v274_v16 }
  0xef   : > { %v409_v50 = vpop.f32.mrf.mxu0 }
  0xf0   : > { %v410_v17 = vadd.f32 %v409_v50, %v279_v11 }
  0xf1   : > { %v411_v51 = vpop.f32.mrf.mxu0 }
  0xf2   : > { %v412_v15 = vadd.f32 %v411_v51, %v279_v11 }
  0xf3   : > { %v415_v52 = vpop.f32.mrf.mxu0 }
  0xf4   : > { %v416_v14 = vadd.f32 %v415_v52, %v284_v8 }
  0xf5   : > { %v417_v53 = vpop.f32.mrf.mxu0 }
  0xf6   : > { %v418_v13 = vadd.f32 %v417_v53, %v284_v8 }
  0xf7   : > { %v421_v54 = vpop.f32.mrf.mxu0 }
  0xf8   : > { %v422_v12 = vadd.f32 %v421_v54, %v289_v0 }
  0xf9   : > { %v423_v55 = vpop.f32.mrf.mxu0 }
  0xfa   : > { %v424_v10 = vadd.f32 %v423_v55, %v289_v0 }
  0xfb   : > { %v427_v56 = vpop.f32.mrf.mxu0 }
  0xfc   : > { %v428_v9 = vadd.f32 %v427_v56, %v294_v59 }
  0xfd   : > { %v429_v58 = vpop.f32.mrf.mxu0 }
  0xfe   : > { %v430_v7 = vadd.f32 %v429_v58, %v294_v59  ;;  %v514_v58 = vpop.permute.xlu0 %513 }
  0xff   : > { %v433_v60 = vpop.f32.mrf.mxu0 }
 0x100   : > { %v434_v6 = vadd.f32 %v433_v60, %v299_v62  ;;  %v509_v60 = vpop.permute.xlu1 %508 }
 0x101   : > { %v435_v61 = vpop.f32.mrf.mxu0 }
 0x102   : > { %v436_v3 = vadd.f32 %v435_v61, %v299_v62 }
 0x103   : > { %v439_v63 = vpop.f32.mrf.mxu0 }
 0x104   : > { %v440_v1 = vadd.f32 %v439_v63, %v304_v57  ;;  %v504_v63 = vpop.permute.xlu0 %503 }
 0x105   : > { %v441_v2 = vpop.f32.mrf.mxu0 }
 0x106   : > { %v442_v5 = vadd.f32 %v441_v2, %v304_v57 }
 0x108   : > { %1381 = vtanh.f32 %v442_v5 }
 0x109   : > { %1383 = vtanh.f32 %v440_v1  ;;  %v499_v1 = vpop.permute.xlu1 %498 }
 0x10a   : > { %1385 = vtanh.f32 %v436_v3 }
 0x10b   : > { %1387 = vtanh.f32 %v434_v6 }
 0x10c   : > { %1389 = vtanh.f32 %v430_v7 }
 0x10d   : > { %1391 = vtanh.f32 %v428_v9  ;;  %v494_v9 = vpop.permute.xlu0 %493 }
 0x10e   : > { %1393 = vtanh.f32 %v424_v10 }
 0x10f   : > { %1395 = vtanh.f32 %v422_v12  ;;  %v489_v12 = vpop.permute.xlu1 %488 }
 0x110   : > { %1397 = vtanh.f32 %v418_v13 }
 0x111   : > { %1399 = vtanh.f32 %v416_v14 }
 0x112   : > { %1401 = vtanh.f32 %v412_v15 }
 0x113   : > { %1403 = vtanh.f32 %v410_v17  ;;  %v484_v17 = vpop.permute.xlu0 %483 }
 0x114   : > { %1405 = vtanh.f32 %v406_v18 }
 0x115   : > { %v1382_v23 = vpop.eup %1381  ;;  %1407 = vtanh.f32 %v404_v20  ;;  %v479_v20 = vpop.permute.xlu1 %478 }
 0x116   : > { %v1384_v24 = vpop.eup %1383  ;;  %1409 = vtanh.f32 %v400_v21  ;;  %557 = vmatprep.subr.mxu1 %v1382_v23 }
 0x117   : > { %v1386_v25 = vpop.eup %1385  ;;  %1411 = vtanh.f32 %v398_v22  ;;  %558 = vmatpush1.msra.mxu1 %v1384_v24 }
 0x118   : > { %v1388_v26 = vpop.eup %1387  ;;  %559 = vmatprep.subr.mxu1 %v1386_v25 }
 0x119   : > { %v1390_v27 = vpop.eup %1389  ;;  %560 = vmatpush1.msra.mxu1 %v1388_v26 }
 0x11a   : > { %v1392_v28 = vpop.eup %1391  ;;  %561 = vmatprep.subr.mxu1 %v1390_v27 }
 0x11b   : > { %v1394_v29 = vpop.eup %1393  ;;  %562 = vmatpush1.msra.mxu1 %v1392_v28 }
 0x11c   : > { %v1396_v30 = vpop.eup %1395  ;;  %563 = vmatprep.subr.mxu1 %v1394_v29 }
 0x11d   : > { %v1398_v31 = vpop.eup %1397  ;;  %564 = vmatpush1.msra.mxu1 %v1396_v30 }
 0x11e   : > { %v1400_v32 = vpop.eup %1399  ;;  %565 = vmatprep.subr.mxu1 %v1398_v31 }
 0x11f   : > { %v1402_v33 = vpop.eup %1401  ;;  %566 = vmatpush1.msra.mxu1 %v1400_v32 }
 0x120   : > { %v1404_v34 = vpop.eup %1403  ;;  %567 = vmatprep.subr.mxu1 %v1402_v33 }
 0x121   : > { %v1406_v35 = vpop.eup %1405  ;;  %568 = vmatpush1.msra.mxu1 %v1404_v34 }
 0x122   : > { %v1408_v36 = vpop.eup %1407  ;;  %569 = vmatprep.subr.mxu1 %v1406_v35  ;;  %v767_v35 = vld [vmem:[%s243_s6] sm:$0xff]  ;;  %s1193_s6 = scalar_lea.sflag [#allocation4], %s1640_s8 }
 0x123   : > { %v1410_v37 = vpop.eup %1409  ;;  %570 = vmatpush1.msra.mxu1 %v1408_v36 }
 0x124   : > { %v1412_v39 = vpop.eup %1411  ;;  %571 = vmatprep.subr.mxu1 %v1410_v37 }
 0x125   : > { %572 = vmatpush1.msra.mxu1 %v1412_v39  ;;  %v797_v39 = vcombine.high %v767_v35, %v767_v35 }
 0x126   : > { %1305 = vmatmul.mubr.msk.f32.vlgmr.msra.gmra.mxu1 %vm516_vm1, %v460_v38 }
 0x127   : > { %611 = vmatprep.mubr.f32.mxu1 %v1551_v4 }
 0x12a   : > { %1306 = vmatmul.mubr.msk.f32.gmra.mxu1 %vm516_vm1, %v461_v40 }
 0x12b   : > { %617 = vmatprep.mubr.f32.mxu1 %v1551_v4 }
 0x12e   : > { %1307 = vmatmul.mubr.msk.f32.gmra.mxu1 %vm516_vm1, %v462_v41  ;;  %v670_v41 = vld [vmem:[%s1942_s2 + $0x80] sm:$0xff] }
 0x12f   : > { %623 = vmatprep.mubr.f32.mxu1 %v1551_v4 }
 0x132   : > { %1308 = vmatmul.mubr.msk.f32.gmra.mxu1 %vm516_vm1, %v463_v42 }
 0x133   : > { %629 = vmatprep.mubr.f32.mxu1 %v1551_v4 }
 0x136   : > { %1309 = vmatmul.mubr.msk.f32.gmra.mxu1 %vm516_vm1, %v464_v43  ;;  %v671_v43 = vld [vmem:[%s1942_s2 + $0x88] sm:$0xff] }
 0x137   : > { %635 = vmatprep.mubr.f32.mxu1 %v1551_v4 }
 0x13a   : > { %1310 = vmatmul.mubr.msk.f32.gmra.mxu1 %vm516_vm1, %v465_v44  ;;  %v768_v44 = vld [vmem:[%s1942_s2 + $0x90] sm:$0xff] }
 0x13b   : > { %641 = vmatprep.mubr.f32.mxu1 %v1551_v4 }
 0x13e   : > { %1311 = vmatmul.mubr.msk.f32.gmra.mxu1 %vm516_vm1, %v466_v45  ;;  %v769_v45 = vld [vmem:[%s1942_s2 + $0x98] sm:$0xff] }
 0x13f   : > { %647 = vmatprep.mubr.f32.mxu1 %v1551_v4 }
 0x142   : > { %1312 = vmatmul.mubr.msk.f32.gmra.mxu1 %vm516_vm1, %v467_v46  ;;  %v770_v46 = vld [vmem:[%s1942_s2 + $0xa0] sm:$0xff] }
 0x143   : > { %1018 = vmatprep.mubr.f32.mxu1 %v1551_v4 }
 0x1e6   : > { %v607_v47 = vpop.f32.mrf.mxu1 }
 0x1e7   : > { %v608_v23 = vadd.f32 %v607_v47, %v479_v20  ;;  %v771_v47 = vld [vmem:[%s1942_s2 + $0xa8] sm:$0xff] }
 0x1e8   : > { %v609_v48 = vpop.f32.mrf.mxu1 }
 0x1e9   : > { %v610_v22 = vadd.f32 %v609_v48, %v479_v20  ;;  %v916_v20 = vld [vmem:[%s1942_s2 + $0xc8] sm:$0xff] }
 0x1ea   : > { %v613_v49 = vpop.f32.mrf.mxu1 }
 0x1eb   : > { %v614_v21 = vadd.f32 %v613_v49, %v484_v17 }
 0x1ec   : > { %v615_v50 = vpop.f32.mrf.mxu1 }
 0x1ed   : > { %v616_v19 = vadd.f32 %v615_v50, %v484_v17 }
 0x1ee   : > { %v619_v51 = vpop.f32.mrf.mxu1 }
 0x1ef   : > { %v620_v18 = vadd.f32 %v619_v51, %v489_v12 }
 0x1f0   : > { %v621_v52 = vpop.f32.mrf.mxu1 }
 0x1f1   : > { %v622_v16 = vadd.f32 %v621_v52, %v489_v12 }
 0x1f2   : > { %v625_v53 = vpop.f32.mrf.mxu1 }
 0x1f3   : > { %v626_v15 = vadd.f32 %v625_v53, %v494_v9 }
 0x1f4   : > { %v627_v54 = vpop.f32.mrf.mxu1 }
 0x1f5   : > { %v628_v14 = vadd.f32 %v627_v54, %v494_v9 }
 0x1f6   : > { %v631_v55 = vpop.f32.mrf.mxu1 }
 0x1f7   : > { %v632_v13 = vadd.f32 %v631_v55, %v499_v1 }
 0x1f8   : > { %v633_v56 = vpop.f32.mrf.mxu1 }
 0x1f9   : > { %v634_v11 = vadd.f32 %v633_v56, %v499_v1 }
 0x1fa   : > { %v637_v57 = vpop.f32.mrf.mxu1 }
 0x1fb   : > { %v638_v10 = vadd.f32 %v637_v57, %v504_v63  ;;  %v794_v57 = vpop.permute.xlu0 %793 }
 0x1fc   : > { %v639_v59 = vpop.f32.mrf.mxu1 }
 0x1fd   : > { %v640_v8 = vadd.f32 %v639_v59, %v504_v63  ;;  %v789_v59 = vpop.permute.xlu1 %788 }
 0x1fe   : > { %v643_v61 = vpop.f32.mrf.mxu1 }
 0x1ff   : > { %v644_v7 = vadd.f32 %v643_v61, %v509_v60  ;;  %v784_v1 = vpop.permute.xlu0 %783 }
 0x200   : > { %v645_v62 = vpop.f32.mrf.mxu1 }
 0x201   : > { %v646_v5 = vadd.f32 %v645_v62, %v509_v60 }
 0x202   : > { %v649_v0 = vpop.f32.mrf.mxu1 }
 0x203   : > { %v650_v2 = vadd.f32 %v649_v0, %v514_v58 }
 0x204   : > { %v651_v3 = vpop.f32.mrf.mxu1 }
 0x205   : > { %v652_v6 = vadd.f32 %v651_v3, %v514_v58 }
 0x207   : > { %1413 = vtanh.f32 %v652_v6 }
 0x208   : > { %1415 = vtanh.f32 %v650_v2 }
 0x209   : > { %1417 = vtanh.f32 %v646_v5  ;;  %v779_v5 = vpop.permute.xlu1 %778 }
 0x20a   : > { %1419 = vtanh.f32 %v644_v7 }
 0x20b   : > { %1421 = vtanh.f32 %v640_v8 }
 0x20c   : > { %1423 = vtanh.f32 %v638_v10 }
 0x20d   : > { %1425 = vtanh.f32 %v634_v11 }
 0x20e   : > { %1427 = vtanh.f32 %v632_v13 }
 0x20f   : > { %1429 = vtanh.f32 %v628_v14 }
 0x210   : > { %1431 = vtanh.f32 %v626_v15 }
 0x211   : > { %1433 = vtanh.f32 %v622_v16  ;;  %v913_v16 = vld [vmem:[%s1942_s2 + $0xb0] sm:$0xff] }
 0x212   : > { %1435 = vtanh.f32 %v620_v18  ;;  %v914_v18 = vld [vmem:[%s1942_s2 + $0xb8] sm:$0xff] }
 0x213   : > { %1437 = vtanh.f32 %v616_v19  ;;  %v915_v19 = vld [vmem:[%s1942_s2 + $0xc0] sm:$0xff] }
 0x214   : > { %v1414_v24 = vpop.eup %1413  ;;  %1439 = vtanh.f32 %v614_v21 }
 0x215   : > { %v1416_v25 = vpop.eup %1415  ;;  %1441 = vtanh.f32 %v610_v22  ;;  %706 = vmatprep.subr.mxu0 %v1414_v24 }
 0x216   : > { %v1418_v26 = vpop.eup %1417  ;;  %1443 = vtanh.f32 %v608_v23  ;;  %707 = vmatpush1.msra.mxu0 %v1416_v25 }
 0x217   : > { %v1420_v27 = vpop.eup %1419  ;;  %708 = vmatprep.subr.mxu0 %v1418_v26  ;;  %v939_v26 = vpop.permute.xlu0 %938 }
 0x218   : > { %v1422_v28 = vpop.eup %1421  ;;  %709 = vmatpush1.msra.mxu0 %v1420_v27 }
 0x219   : > { %v1424_v29 = vpop.eup %1423  ;;  %710 = vmatprep.subr.mxu0 %v1422_v28  ;;  %v934_v28 = vpop.permute.xlu1 %933 }
 0x21a   : > { %v1426_v30 = vpop.eup %1425  ;;  %711 = vmatpush1.msra.mxu0 %v1424_v29 }
 0x21b   : > { %v1428_v31 = vpop.eup %1427  ;;  %712 = vmatprep.subr.mxu0 %v1426_v30 }
 0x21c   : > { %v1430_v32 = vpop.eup %1429  ;;  %713 = vmatpush1.msra.mxu0 %v1428_v31 }
 0x21d   : > { %v1432_v33 = vpop.eup %1431  ;;  %714 = vmatprep.subr.mxu0 %v1430_v32 }
 0x21e   : > { %v1434_v34 = vpop.eup %1433  ;;  %715 = vmatpush1.msra.mxu0 %v1432_v33 }
 0x21f   : > { %v1436_v36 = vpop.eup %1435  ;;  %716 = vmatprep.subr.mxu0 %v1434_v34  ;;  %v929_v34 = vpop.permute.xlu0 %928 }
 0x220   : > { %v1438_v37 = vpop.eup %1437  ;;  %717 = vmatpush1.msra.mxu0 %v1436_v36 }
 0x221   : > { %v1440_v38 = vpop.eup %1439  ;;  %718 = vmatprep.subr.mxu0 %v1438_v37  ;;  %v924_v37 = vpop.permute.xlu1 %923 }
 0x222   : > { %v1442_v40 = vpop.eup %1441  ;;  %719 = vmatpush1.msra.mxu0 %v1440_v38 }
 0x223   : > { %v1444_v42 = vpop.eup %1443  ;;  %720 = vmatprep.subr.mxu0 %v1442_v40 }
 0x224   : > { %721 = vmatpush1.msra.mxu0 %v1444_v42 }
 0x225   : > { %1313 = vmatmul.mubr.msk.f32.vlgmr.msra.gmra.mxu0 %vm516_vm1, %v670_v41  ;;  %1315 = vmatprep.subr.msk.mxu0 %vm811_vm2, %v797_v39 }
 0x226   : > { %760 = vmatprep.mubr.f32.mxu0 %v1551_v4  ;;  %1316 = vmatpush1.msk.msra.mxu0 %vm811_vm2, %v767_v35 }
 0x229   : > { %1314 = vmatmul.mubr.msk.f32.gmra.mxu0 %vm516_vm1, %v671_v43 }
 0x22a   : > { %880 = vmatprep.mubr.f32.mxu0 %v1551_v4 }
 0x22d   : > { %1317 = vmatmul.mubr.msk.f32.vlgmr.msra.gmra.mxu0 %vm798_vm3, %v768_v44 }
 0x22e   : > { %886 = vmatprep.mubr.f32.mxu0 %v1551_v4 }
 0x231   : > { %1318 = vmatmul.mubr.msk.f32.gmra.mxu0 %vm798_vm3, %v769_v45 }
 0x232   : > { %892 = vmatprep.mubr.f32.mxu0 %v1551_v4 }
 0x235   : > { %1319 = vmatmul.mubr.msk.f32.gmra.mxu0 %vm798_vm3, %v770_v46 }
 0x236   : > { %898 = vmatprep.mubr.f32.mxu0 %v1551_v4 }
 0x239   : > { %1320 = vmatmul.mubr.msk.f32.gmra.mxu0 %vm798_vm3, %v771_v47 }
 0x23a   : > { %1135 = vmatprep.mubr.f32.mxu0 %v1551_v4 }
 0x2e5   : > { %v1839_v48 = vpop.f32.mrf.mxu0 }
 0x2e7   : > { %v1841_v49 = vpop.f32.mrf.mxu0 }
 0x2e9   : > { %v1843_v50 = vpop.f32.mrf.mxu0 }
 0x2eb   : > { %v1845_v51 = vpop.f32.mrf.mxu0 }
 0x2ed   : > { %v882_v52 = vpop.f32.mrf.mxu0 }
 0x2ee   : > { %v883_v8 = vadd.f32 %v882_v52, %v779_v5  ;;  %v1051_v52 = vld [vmem:[%s1942_s2 + $0xd0] sm:$0xff] }
 0x2ef   : > { %v884_v53 = vpop.f32.mrf.mxu0 }
 0x2f0   : > { %v885_v7 = vadd.f32 %v884_v53, %v779_v5 }
 0x2f1   : > { %v888_v54 = vpop.f32.mrf.mxu0 }
 0x2f2   : > { %v889_v6 = vadd.f32 %v888_v54, %v784_v1  ;;  %v1052_v54 = vld [vmem:[%s1942_s2 + $0xd8] sm:$0xff] }
 0x2f3   : > { %v890_v55 = vpop.f32.mrf.mxu0 }
 0x2f4   : > { %v891_v3 = vadd.f32 %v890_v55, %v784_v1  ;;  %v1063_v55 = vpop.permute.xlu1 %1062 }
 0x2f5   : > { %v894_v56 = vpop.f32.mrf.mxu0 }
 0x2f6   : > { %v895_v2 = vadd.f32 %v894_v56, %v789_v59 }
 0x2f7   : > { %v896_v58 = vpop.f32.mrf.mxu0 }
 0x2f8   : > { %v897_v63 = vadd.f32 %v896_v58, %v789_v59  ;;  %v1058_v56 = vpop.permute.xlu1 %1057 }
 0x2f9   : > { %v900_v60 = vpop.f32.mrf.mxu0 }
 0x2fa   : > { %v901_v61 = vadd.f32 %v900_v60, %v794_v57  ;;  %v682_v60 = vpop.permute.xlu0 %681 }
 0x2fb   : > { %v902_v62 = vpop.f32.mrf.mxu0  ;;  %v765_v1 = vadd.f32 %v1845_v51, %v682_v60 }
 0x2fc   : > { %v903_v0 = vadd.f32 %v902_v62, %v794_v57  ;;  %v763_v62 = vadd.f32 %v1843_v50, %v682_v60 }
 0x2fe   : > { %1445 = vtanh.f32 %v903_v0 }
 0x2ff   : > { %1447 = vtanh.f32 %v901_v61 }
 0x300   : > { %1449 = vtanh.f32 %v897_v63 }
 0x301   : > { %1451 = vtanh.f32 %v895_v2 }
 0x302   : > { %1453 = vtanh.f32 %v891_v3 }
 0x303   : > { %1455 = vtanh.f32 %v889_v6 }
 0x304   : > { %1457 = vtanh.f32 %v885_v7 }
 0x305   : > { %1459 = vtanh.f32 %v883_v8 }
 0x30b   : > { %v1446_v9 = vpop.eup %1445 }
 0x30c   : > { %v1448_v10 = vpop.eup %1447  ;;  %978 = vmatprep.subr.mxu1 %v1446_v9 }
 0x30d   : > { %v1450_v11 = vpop.eup %1449  ;;  %979 = vmatpush1.msra.mxu1 %v1448_v10 }
 0x30e   : > { %v1452_v12 = vpop.eup %1451  ;;  %980 = vmatprep.subr.mxu1 %v1450_v11 }
 0x30f   : > { %v1454_v13 = vpop.eup %1453  ;;  %981 = vmatpush1.msra.mxu1 %v1452_v12 }
 0x310   : > { %v1456_v14 = vpop.eup %1455  ;;  %982 = vmatprep.subr.mxu1 %v1454_v13 }
 0x311   : > { %v1458_v15 = vpop.eup %1457  ;;  %983 = vmatpush1.msra.mxu1 %v1456_v14  ;;  %v677_v14 = vpop.permute.xlu0 %676 }
 0x312   : > { %v1460_v17 = vpop.eup %1459  ;;  %984 = vmatprep.subr.mxu1 %v1458_v15  ;;  %v757_v51 = vadd.f32 %v1839_v48, %v677_v14 }
 0x313   : > { %985 = vmatpush1.msra.mxu1 %v1460_v17  ;;  %v759_v17 = vadd.f32 %v1841_v49, %v677_v14 }
 0x314   : > { %1321 = vmatmul.mubr.msk.f32.vlgmr.msra.gmra.mxu1 %vm941_vm4, %v913_v16 }
 0x315   : > { %1024 = vmatprep.mubr.f32.mxu1 %v1551_v4 }
 0x318   : > { %1322 = vmatmul.mubr.msk.f32.gmra.mxu1 %vm941_vm4, %v914_v18 }
 0x319   : > { %1030 = vmatprep.mubr.f32.mxu1 %v1551_v4 }
 0x31c   : > { %1323 = vmatmul.mubr.msk.f32.gmra.mxu1 %vm941_vm4, %v915_v19 }
 0x31d   : > { %1036 = vmatprep.mubr.f32.mxu1 %v1551_v4 }
 0x320   : > { %1324 = vmatmul.mubr.msk.f32.gmra.mxu1 %vm941_vm4, %v916_v20 }
 0x3d4   : > { %v1020_v21 = vpop.f32.mrf.mxu1 }
 0x3d5   : > { %v1021_v40 = vadd.f32 %v1020_v21, %v924_v37 }
 0x3d6   : > { %v1022_v22 = vpop.f32.mrf.mxu1 }
 0x3d7   : > { %v1023_v39 = vadd.f32 %v1022_v22, %v924_v37 }
 0x3d8   : > { %v1026_v23 = vpop.f32.mrf.mxu1 }
 0x3d9   : > { %v1027_v38 = vadd.f32 %v1026_v23, %v929_v34 }
 0x3da   : > { %v1028_v24 = vpop.f32.mrf.mxu1 }
 0x3db   : > { %v1029_v36 = vadd.f32 %v1028_v24, %v929_v34 }
 0x3dc   : > { %v1032_v25 = vpop.f32.mrf.mxu1 }
 0x3dd   : > { %v1033_v35 = vadd.f32 %v1032_v25, %v934_v28 }
 0x3de   : > { %v1034_v27 = vpop.f32.mrf.mxu1 }
 0x3df   : > { %v1035_v32 = vadd.f32 %v1034_v27, %v934_v28 }
 0x3e0   : > { %v1038_v29 = vpop.f32.mrf.mxu1 }
 0x3e1   : > { %v1039_v30 = vadd.f32 %v1038_v29, %v939_v26 }
 0x3e2   : > { %v1040_v31 = vpop.f32.mrf.mxu1 }
 0x3e3   : > { %v1041_v33 = vadd.f32 %v1040_v31, %v939_v26 }
 0x3e5   : > { %1461 = vtanh.f32 %v1041_v33 }
 0x3e6   : > { %1463 = vtanh.f32 %v1039_v30 }
 0x3e7   : > { %1465 = vtanh.f32 %v1035_v32 }
 0x3e8   : > { %1467 = vtanh.f32 %v1033_v35 }
 0x3e9   : > { %1469 = vtanh.f32 %v1029_v36 }
 0x3ea   : > { %1471 = vtanh.f32 %v1027_v38 }
 0x3eb   : > { %1473 = vtanh.f32 %v1023_v39 }
 0x3ec   : > { %1475 = vtanh.f32 %v1021_v40 }
 0x3f2   : > { %v1462_v41 = vpop.eup %1461 }
 0x3f3   : > { %v1464_v42 = vpop.eup %1463  ;;  %1095 = vmatprep.subr.mxu0 %v1462_v41 }
 0x3f4   : > { %v1466_v43 = vpop.eup %1465  ;;  %1096 = vmatpush1.msra.mxu0 %v1464_v42 }
 0x3f5   : > { %v1468_v44 = vpop.eup %1467  ;;  %1097 = vmatprep.subr.mxu0 %v1466_v43 }
 0x3f6   : > { %v1470_v45 = vpop.eup %1469  ;;  %1098 = vmatpush1.msra.mxu0 %v1468_v44 }
 0x3f7   : > { %v1472_v46 = vpop.eup %1471  ;;  %1099 = vmatprep.subr.mxu0 %v1470_v45 }
 0x3f8   : > { %v1474_v47 = vpop.eup %1473  ;;  %1100 = vmatpush1.msra.mxu0 %v1472_v46 }
 0x3f9   : > { %v1476_v53 = vpop.eup %1475  ;;  %1101 = vmatprep.subr.mxu0 %v1474_v47 }
 0x3fa   : > { %1102 = vmatpush1.msra.mxu0 %v1476_v53 }
 0x3fb   : > { %1325 = vmatmul.mubr.msk.f32.vlgmr.msra.gmra.mxu0 %vm941_vm4, %v1051_v52 }
 0x3fc   : > { %1141 = vmatprep.mubr.f32.mxu0 %v1551_v4 }
 0x3ff   : > { %1326 = vmatmul.mubr.msk.f32.gmra.mxu0 %vm941_vm4, %v1052_v54 }
 0x4bb   : > { %v1137_v57 = vpop.f32.mrf.mxu0 }
 0x4bc   : > { %v1138_v58 = vadd.f32 %v1137_v57, %v1058_v56 }
 0x4bd   : > { %v1139_v59 = vpop.f32.mrf.mxu0 }
 0x4be   : > { %1188 = vst [vmem:[%s1876_s23 + $0x20] sm:$0xff] %v1138_v58  ;;  %v1140_v4 = vadd.f32 %v1139_v59, %v1058_v56  ;;  %v1158_v18 = vsub.f32 %v1138_v58, %v757_v51 }
 0x4bf   : > { %v1143_v61 = vpop.f32.mrf.mxu0 }
 0x4c0   : > { %1189 = vst [vmem:[%s1876_s23 + $0x28] sm:$0xff] %v1140_v4  ;;  %v1144_v63 = vadd.f32 %v1143_v61, %v1063_v55  ;;  %v1159_v22 = vsub.f32 %v1140_v4, %v759_v17 }
 0x4c1   : > { %v1145_v0 = vpop.f32.mrf.mxu0 }
 0x4c2   : > { %v1148_v2 = vsub.f32 %v763_v62, %v1144_v63  ;;  %1190 = vst [vmem:[%s1876_s23 + $0x30] sm:$0xff] %v1144_v63  ;;  %v1146_v3 = vadd.f32 %v1145_v0, %v1063_v55 }
 0x4c4   : > { %v1150_v5 = vmul.f32 0.5, %v1148_v2  ;;  %v1166_v6 = vand.u32 2147483647, %v1148_v2  ;;  %v1149_v7 = vsub.f32 %v765_v1, %v1146_v3  ;;  %1191 = vst [vmem:[%s1876_s23 + $0x38] sm:$0xff] %v1146_v3  ;;  %v1164_v30 = vmax.f32 %v1148_v2, 0.0 }
 0x4c6   : > { %1477 = vtanh.f32 %v1150_v5  ;;  %v1168_v8 = vsub.f32 0.0, %v1166_v6  ;;  %v1151_v9 = vmul.f32 0.5, %v1149_v7  ;;  %v1167_v10 = vand.u32 2147483647, %v1149_v7 }
 0x4c7   : > { %v1165_v34 = vmax.f32 %v1149_v7, 0.0 }
 0x4c8   : > { %v1170_v11 = vmul.f32 1.442695, %v1168_v8  ;;  %1479 = vtanh.f32 %v1151_v9  ;;  %v1169_v12 = vsub.f32 0.0, %v1167_v10 }
 0x4ca   : > { %1481 = vpow2.f32 %v1170_v11  ;;  %v1172_v50 = vmul.f32 1.442695, %v1169_v12 }
 0x4cc   : > { %1483 = vpow2.f32 %v1172_v50 }
 0x4d3   : > { %v1478_v13 = vpop.eup %1477 }
 0x4d4   : > { %v1154_v15 = vadd.f32 1.0, %v1478_v13 }
 0x4d5   : > { %v1480_v16 = vpop.eup %1479 }
 0x4d6   : > { %v1156_v19 = vmul.f32 0.5, %v1154_v15  ;;  %v1155_v20 = vadd.f32 1.0, %v1480_v16 }
 0x4d7   : > { %v1482_v21 = vpop.eup %1481 }
 0x4d8   : > { %v1160_v23 = vmul.f32 %v1158_v18, %v1156_v19  ;;  %v1174_v24 = vadd.f32 1.0, %v1482_v21  ;;  %v1157_v25 = vmul.f32 0.5, %v1155_v20 }
 0x4d9   : > { %v1484_v26 = vpop.eup %1483 }
 0x4da   : > { %v1162_v27 = vadd.f32 %v1160_v23, %v757_v51  ;;  %1485 = vlog2.f32 %v1174_v24  ;;  %v1161_v48 = vmul.f32 %v1159_v22, %v1157_v25  ;;  %v1175_v28 = vadd.f32 1.0, %v1484_v26 }
 0x4dc   : > { %1184 = vst [vmem:[%s1876_s23] sm:$0xff] %v1162_v27  ;;  %v1163_v29 = vadd.f32 %v1161_v48, %v759_v17  ;;  %1487 = vlog2.f32 %v1175_v28 }
 0x4de   : > { %1185 = vst [vmem:[%s1876_s23 + $0x8] sm:$0xff] %v1163_v29 }
 0x4e7   : > { %v1486_v49 = vpop.eup %1485 }
 0x4e8   : > { %v1177_v31 = vmul.f32 0.6931472, %v1486_v49 }
 0x4e9   : > { %v1488_v32 = vpop.eup %1487 }
 0x4ea   : > { %v1180_v33 = vadd.f32 %v1177_v31, %v1164_v30  ;;  %v1179_v35 = vmul.f32 0.6931472, %v1488_v32 }
 0x4ec   : > { %v1182_v36 = vsub.f32 %v763_v62, %v1180_v33  ;;  %v1181_v37 = vadd.f32 %v1179_v35, %v1165_v34 }
 0x4ee   : > { %1186 = vst [vmem:[%s1876_s23 + $0x10] sm:$0xff] %v1182_v36  ;;  %v1183_v38 = vsub.f32 %v765_v1, %v1181_v37 }
 0x4f0   : > { %1187 = vst [vmem:[%s1876_s23 + $0x18] sm:$0xff] %v1183_v38 }
 0x4f1   : > { %1502 = shalt.err (!%p1499_p7)
}
 0x4f2   : > { %s1503_s11 = scalar_lea.hbm %s1896_s5, 1024  ;;  %s1507_s14 = scalar_lea.hbm %s1944_s4, 2048 }
 0x4f3   : > { %p1504_p10 = scmp.ne.s32.totalorder %s1896_s5, %s1503_s11  ;;  %p1508_p13 = scmp.lt.s32.totalorder %s1896_s5, %s1944_s4 }
 0x4f4   : > { %p1509_p0 = scmp.lt.s32.totalorder %s1507_s14, %s1503_s11 }
 0x4f5   : > { %p1505_p11 = pnand %p1504_p10, %p1621_p6 }
 0x4f6   : > { %p1510_p1 = por %p1509_p0, %p1508_p13 }
 0x4f7   : > { %p1506_p12 = pneg %p1505_p11 }
 0x4f9   : > { %p1511_p2 = pnand %p1510_p1, %p1506_p12 }
 0x4fb   : > { %1514 = shalt.err (!%p1511_p2)
}
 0x4fc   : > { %s1554_s23 = smov 256   ;;  %s1555_s28 = smov 512  }
 0x4fd   : > { %s1556_s29 = smov 16  }
 0x4fe   : > { %1334 = dma.vmem_to_hbm [thread:$0]  (%p1621_p6), %s1890_s27, 1024, %s1896_s5, %s1193_s6, %s1554_s23, %s1555_s28, %s1556_s29  }
 0x4ff PF: > { %s1221_s30 = sand.u32 1, %s1537_s15   ;;  %p1337_p3 = pnand %p1288_p9, %p1625_p8 }
 0x500   : > { %s1222_s7 = scalar_lea.sflag [#allocation4], %s1221_s30 }
 0x501   : > { %p1338_p4 = pneg %p1337_p3 }
 0x503   : > { %1532 = dma.done.wait (%p1338_p4), %s1222_s7, 1024  }
 0x504   : > { %1534 = vsyncadd (%p1338_p4), %s1222_s7, 4294966272  ;;  %p14_p5 = scmp.ge.s32.totalorder %s1607_s21, 4   ;;  %s1947_s15 = smov %s1541_s16 }
 0x505   : > { %s1948_s16 = smov %s1545_s17  ;;  %s1949_s17 = smov %s1619_s24 }
 0x506   : > { %s1950_s18 = smov %s1607_s21  ;;  %16 = sbr.rel (!%p14_p5) target bundleno = 3 (0x3), region = 102 }
 0x50b   :  { %1227 = vsyncpa [#allocation4], 1 }
 0x50c   :  { %1229 = vsyncpa [#allocation4 + $0x1], 1 }

</bundles_post_ra>
